<compile_context>
chip_gen: v7x
topology: tpu7x:2x2x1
jax: 0.10.0
libtpu: 0.0.40
codegen_flags: <defaults>
</compile_context>

<pallas_src>
import functools

import jax
import jax.numpy as jnp
from jax.experimental import pallas as pl
from jax.experimental.pallas import tpu as pltpu

_BN_EPS = 1e-5


def _vmem_limit_bytes():
    """Per-generation scoped-VMEM budget (~75% of physical capacity)."""
    cap = 64 * 1024 * 1024  # conservative default = v7x physical VMEM
    try:
        info = pltpu.get_tpu_info()
        cap = int(getattr(info, "vmem_capacity_bytes", cap))
    except Exception:  # hardware query unavailable -> keep conservative default
        pass
    limit = int(cap * 0.75)
    return max(32 * 1024 * 1024, min(limit, 100 * 1024 * 1024))


def _pick_tile_and_pad(hw, cin, cout, x_item, out_item, vmem_limit):
    """Byte-based spatial tile sizing for the tiled (two-phase) path.

    Per-lane VMEM cost per phase-2 grid step: 2x double-buffered x tile,
    2x double-buffered out tile, plus f32 temps (upcast x, BN+ReLU result,
    f32 matmul output).  The x block is additionally capped at ~4 MiB: big
    enough to sit near the HBM roofline, small enough to keep several grid
    steps alive for pipelining / megacore sharding.
    """
    per_lane = cin * (2 * x_item + 8) + cout * (2 * out_item + 4)
    overhead = 2 * 1024 * 1024  # weights, scale/shift, compiler scratch
    t_budget = max(128, (vmem_limit - overhead) // per_lane)
    t_cap = max(128, (4 * 1024 * 1024) // max(1, cin * x_item))
    tile = (int(min(t_budget, t_cap)) // 128) * 128
    tile = max(128, tile)
    hw128 = -(-hw // 128) * 128
    if tile >= hw128:
        tile = hw128          # whole spatial extent in one lane-dense tile
    hw_pad = -(-hw // tile) * tile
    return tile, hw_pad


# ---------------------------------------------------------------------------
# Kernels
# ---------------------------------------------------------------------------
def _fused_kernel(x_ref, gamma_ref, beta_ref, w_ref, b_ref, o_ref, *,
                  inv_count, eps, hw_valid, hw_pad):
    """Single-HBM-read HeadBlock: x stays resident in VMEM.

    Statistics use a two-pass (mean, then mean-centred variance) formulation:
    numerically robust and lets zero-padded lanes be masked out cheaply.
    """
    n_batch, cin, _ = x_ref.shape

    # Pass 1: per-channel mean over batch and space.
    def _sum_body(n, acc):
        xn = x_ref[n].astype(jnp.float32)                    # (Cin, HWp)
        return acc + jnp.sum(xn, axis=1, keepdims=True)

    total = jax.lax.fori_loop(0, n_batch, _sum_body,
                              jnp.zeros((cin, 1), jnp.float32))
    mean = total * inv_count                                 # (Cin, 1)

    # Pass 2: per-channel biased variance around the mean.
    if hw_pad != hw_valid:  # mask padded lanes out of the centred sum-of-squares
        lane = jax.lax.broadcasted_iota(jnp.int32, (1, hw_pad), 1)
        valid = (lane < hw_valid).astype(jnp.float32)
    else:
        valid = None

    def _var_body(n, acc):
        d = x_ref[n].astype(jnp.float32) - mean
        if valid is not None:
            d = d * valid
        return acc + jnp.sum(d * d, axis=1, keepdims=True)

    varsum = jax.lax.fori_loop(0, n_batch, _var_body,
                               jnp.zeros((cin, 1), jnp.float32))
    inv_std = jax.lax.rsqrt(varsum * inv_count + eps)
    scale = gamma_ref[...] * inv_std                         # folded BN affine
    shift = beta_ref[...] - mean * scale

    # Pass 3: BN + ReLU (single FMA + max) and the 1x1 conv on the MXU.
    def _apply_body(n, carry):
        xn = x_ref[n].astype(jnp.float32)
        y = jnp.maximum(xn * scale + shift, 0.0)
        out = jnp.dot(w_ref[...], y.astype(w_ref.dtype),
                      preferred_element_type=jnp.float32)
        o_ref[n] = (out + b_ref[...]).astype(o_ref.dtype)
        return carry

    jax.lax.fori_loop(0, n_batch, _apply_body, 0)


def _bn_stats_partial_kernel(x_ref, sum_ref, sumsq_ref):
    # x_ref: (1, Cin, tile); outputs: (1, 1, Cin, 1) per-(batch, tile) partials.
    # No cross-grid accumulation -> both grid axes can be "parallel" (megacore).
    x = x_ref[0].astype(jnp.float32)
    sum_ref[0, 0] = jnp.sum(x, axis=1, keepdims=True)
    sumsq_ref[0, 0] = jnp.sum(x * x, axis=1, keepdims=True)


def _bn_relu_conv_kernel(x_ref, scale_ref, shift_ref, w_ref, b_ref, o_ref):
    # x_ref: (1, Cin, tile); scale/shift: (Cin, 1); w: (Cout, Cin); b: (Cout, 1)
    x = x_ref[0].astype(jnp.float32)
    y = jnp.maximum(x * scale_ref[...] + shift_ref[...], 0.0)  # folded BN + ReLU
    out = jnp.dot(w_ref[...], y.astype(w_ref.dtype),           # 1x1 conv on MXU
                  preferred_element_type=jnp.float32)
    o_ref[0] = (out + b_ref[...]).astype(o_ref.dtype)


# ---------------------------------------------------------------------------
# Wrapper
# ---------------------------------------------------------------------------
def head_block(x_nchw, gamma, beta, conv_w, conv_b, *, eps=_BN_EPS,
               running_mean=None, running_var=None, training=True,
               allow_fused=True):
    """HeadBlock forward: BatchNorm2d -> ReLU -> 1x1 Conv2d, NCHW in/out."""
    N, Cin, H, W = x_nchw.shape
    Cout, wcin, kh, kw = conv_w.shape
    if kh != 1 or kw != 1:
        # TODO(synk): kernel_size > 1 (spatial convolution) not implemented.
        raise NotImplementedError("head_block only supports 1x1 convolutions")
    assert wcin == Cin
    HW = H * W

    x_dtype = x_nchw.dtype
    out_dtype = x_dtype
    x_item = jnp.dtype(x_dtype).itemsize
    out_item = jnp.dtype(out_dtype).itemsize

    gamma2 = gamma.reshape(Cin, 1).astype(jnp.float32)
    beta2 = beta.reshape(Cin, 1).astype(jnp.float32)
    w2 = conv_w.reshape(Cout, Cin)                 # keep model dtype for the MXU
    b2 = conv_b.reshape(Cout, 1).astype(jnp.float32)

    x3 = x_nchw.reshape(N, Cin, HW)                # free reshape, stays NCHW
    vmem_limit = _vmem_limit_bytes()
    compiler = functools.partial(pltpu.CompilerParams,
                                 vmem_limit_bytes=vmem_limit)
    count = float(N * HW)
    hw128 = -(-HW // 128) * 128

    def _pad_to(hw_pad):
        if hw_pad == HW:
            return x3
        # Zero-pad the spatial (lane) axis; zeros are excluded from the stats
        # and the padded output columns are sliced off below.
        return jnp.pad(x3, ((0, 0), (0, 0), (0, hw_pad - HW)))

    def _finish(out3, hw_pad):
        if hw_pad != HW:
            out3 = out3[:, :, :HW]
        return out3.reshape(N, Cout, H, W)

    def _apply_tiled(x3p, scale, shift, tile, hw_pad):
        num_t = hw_pad // tile
        flops = 2 * N * HW * Cin * Cout
        bytes_accessed = (N * Cin * hw_pad * x_item
                          + N * Cout * hw_pad * out_item
                          + 4 * (2 * Cin + Cout * (Cin + 1)))
        out3 = pl.pallas_call(
            _bn_relu_conv_kernel,
            out_shape=jax.ShapeDtypeStruct((N, Cout, hw_pad), out_dtype),
            grid_spec=pltpu.PrefetchScalarGridSpec(
                num_scalar_prefetch=0,
                grid=(N, num_t),
                in_specs=[
                    pl.BlockSpec((1, Cin, tile), lambda n, t: (n, 0, t)),
                    pl.BlockSpec((Cin, 1), lambda n, t: (0, 0)),
                    pl.BlockSpec((Cin, 1), lambda n, t: (0, 0)),
                    pl.BlockSpec((Cout, Cin), lambda n, t: (0, 0)),
                    pl.BlockSpec((Cout, 1), lambda n, t: (0, 0)),
                ],
                out_specs=pl.BlockSpec((1, Cout, tile), lambda n, t: (n, 0, t)),
            ),
            compiler_params=compiler(
                dimension_semantics=("parallel", "parallel")),
            cost_estimate=pl.CostEstimate(flops=flops, transcendentals=0,
                                          bytes_accessed=bytes_accessed),
        )(x3p, scale, shift, w2, b2)
        return _finish(out3, hw_pad)

    # ---- Eval-mode fast path: running stats -> scale/shift on the host. ----
    if not training:
        if running_mean is None or running_var is None:
            raise ValueError("eval-mode BatchNorm needs running_mean/running_var")
        rm = running_mean.reshape(Cin, 1).astype(jnp.float32)
        rv = running_var.reshape(Cin, 1).astype(jnp.float32)
        inv_std = jax.lax.rsqrt(rv + eps)
        scale = gamma2 * inv_std
        shift = beta2 - rm * scale
        tile, hw_pad = _pick_tile_and_pad(HW, Cin, Cout, x_item, out_item,
                                          vmem_limit)
        return _apply_tiled(_pad_to(hw_pad), scale, shift, tile, hw_pad)

    # ---- Fused single-HBM-read path (training mode, fits in VMEM). ----
    fused_bytes = (N * Cin * hw128 * x_item + N * Cout * hw128 * out_item
                   + 2 * Cin * hw128 * 4 + Cout * hw128 * 4)
    if allow_fused and fused_bytes <= int(0.35 * vmem_limit):
        x3p = _pad_to(hw128)
        flops = 2 * N * HW * Cin * Cout + 8 * N * HW * Cin
        bytes_accessed = (N * Cin * hw128 * x_item
                          + N * Cout * hw128 * out_item
                          + 4 * (2 * Cin + Cout * (Cin + 1)))
        out3 = pl.pallas_call(
            functools.partial(_fused_kernel, inv_count=1.0 / count, eps=eps,
                              hw_valid=HW, hw_pad=hw128),
            out_shape=jax.ShapeDtypeStruct((N, Cout, hw128), out_dtype),
            grid_spec=pltpu.PrefetchScalarGridSpec(
                num_scalar_prefetch=0,
                grid=(1,),
                in_specs=[
                    pl.BlockSpec((N, Cin, hw128), lambda i: (0, 0, 0)),
                    pl.BlockSpec((Cin, 1), lambda i: (0, 0)),
                    pl.BlockSpec((Cin, 1), lambda i: (0, 0)),
                    pl.BlockSpec((Cout, Cin), lambda i: (0, 0)),
                    pl.BlockSpec((Cout, 1), lambda i: (0, 0)),
                ],
                out_specs=pl.BlockSpec((N, Cout, hw128), lambda i: (0, 0, 0)),
            ),
            compiler_params=compiler(dimension_semantics=("arbitrary",)),
            cost_estimate=pl.CostEstimate(flops=flops, transcendentals=Cin,
                                          bytes_accessed=bytes_accessed),
        )(x3p, gamma2, beta2, w2, b2)
        return _finish(out3, hw128)

    # ---- Tiled two-phase path (large inputs). ----
    tile, hw_pad = _pick_tile_and_pad(HW, Cin, Cout, x_item, out_item, vmem_limit)
    x3p = _pad_to(hw_pad)
    num_t = hw_pad // tile

    # Phase 1: per-(batch, tile) partial sums; no cross-grid accumulation, so
    # both axes are "parallel" and every TensorCore streams x (v7x megacore).
    psum, psumsq = pl.pallas_call(
        _bn_stats_partial_kernel,
        out_shape=(jax.ShapeDtypeStruct((N, num_t, Cin, 1), jnp.float32),
                   jax.ShapeDtypeStruct((N, num_t, Cin, 1), jnp.float32)),
        grid_spec=pltpu.PrefetchScalarGridSpec(
            num_scalar_prefetch=0,
            grid=(N, num_t),
            in_specs=[pl.BlockSpec((1, Cin, tile), lambda n, t: (n, 0, t))],
            out_specs=(pl.BlockSpec((1, 1, Cin, 1), lambda n, t: (n, t, 0, 0)),
                       pl.BlockSpec((1, 1, Cin, 1), lambda n, t: (n, t, 0, 0))),
        ),
        compiler_params=compiler(dimension_semantics=("parallel", "parallel")),
        cost_estimate=pl.CostEstimate(
            flops=3 * N * Cin * hw_pad, transcendentals=0,
            bytes_accessed=N * Cin * hw_pad * x_item + 8 * N * num_t * Cin),
    )(x3p)

    # Tiny finalize in plain XLA: fold BN into per-channel scale/shift.
    # TODO(synk): E[x^2]-E[x]^2 in f32 can cancel for channels with |mean|>>std;
    # the fused path above uses a two-pass (mean-centred) variance instead.
    total = jnp.sum(psum, axis=(0, 1))          # (Cin, 1)
    totalsq = jnp.sum(psumsq, axis=(0, 1))
    mean = total / count
    var = totalsq / count - mean * mean         # biased variance
    inv_std = jax.lax.rsqrt(var + eps)
    scale = gamma2 * inv_std
    shift = beta2 - mean * scale

    return _apply_tiled(x3p, scale, shift, tile, hw_pad)


# ---------------------------------------------------------------------------
# Pure-JAX reference of the same forward pass (sanity check).
# ---------------------------------------------------------------------------
def _reference(x_nchw, gamma, beta, conv_w, conv_b):
    mean = jnp.mean(x_nchw, axis=(0, 2, 3), keepdims=True)
    var = jnp.mean((x_nchw - mean) ** 2, axis=(0, 2, 3), keepdims=True)
    y = (x_nchw - mean) * jax.lax.rsqrt(var + _BN_EPS)
    y = y * gamma[None, :, None, None] + beta[None, :, None, None]
    y = jnp.maximum(y, 0.0)
    w2d = conv_w.reshape(conv_w.shape[0], conv_w.shape[1])  # (Cout, Cin)
    out = jnp.einsum("nchw,oc->nohw", y, w2d) + conv_b[None, :, None, None]
    return out


if __name__ == "__main__":
    key = jax.random.PRNGKey(0)
    k_x, k_g, k_b, k_w, k_cb = jax.random.split(key, 5)

    N, Cin, H, W = 2, 4, 16, 16
    Cout = 8

    x = jax.random.normal(k_x, (N, Cin, H, W), dtype=jnp.float32)
    gamma = jax.random.normal(k_g, (Cin,), dtype=jnp.float32) * 0.1 + 1.0
    beta = jax.random.normal(k_b, (Cin,), dtype=jnp.float32) * 0.1
    conv_w = jax.random.normal(k_w, (Cout, Cin, 1, 1), dtype=jnp.float32) * 0.5
    conv_b = jax.random.normal(k_cb, (Cout,), dtype=jnp.float32) * 0.1

    ref = jax.block_until_ready(_reference(x, gamma, beta, conv_w, conv_b))

    # 1) Fused single-HBM-read path (taken at this size).
    out = jax.block_until_ready(head_block(x, gamma, beta, conv_w, conv_b))
    assert out.shape == (N, Cout, H, W)
    assert jnp.allclose(out, ref, atol=1e-4, rtol=1e-4)

    # 2) Tiled two-phase path (forced), exercising the stats + apply kernels.
    out_t = jax.block_until_ready(
        head_block(x, gamma, beta, conv_w, conv_b, allow_fused=False))
    assert jnp.allclose(out_t, ref, atol=1e-4, rtol=1e-4)

    # 3) Spatial size that is not a multiple of 128 -> lane-padding path.
    Hp = Wp = 15
    xp = jax.random.normal(k_x, (N, Cin, Hp, Wp), dtype=jnp.float32)
    refp = jax.block_until_ready(_reference(xp, gamma, beta, conv_w, conv_b))
    outp = jax.block_until_ready(head_block(xp, gamma, beta, conv_w, conv_b))
    assert outp.shape == (N, Cout, Hp, Wp)
    assert jnp.allclose(outp, refp, atol=1e-4, rtol=1e-4)

    print("KERNEL_OK")
</pallas_src>

<mosaic_0001>
module attributes {stable_mosaic.version = 11 : i64} {
  func.func @_fused_kernel(%arg0: i32, %arg1: memref<2x4x256xf32, #tpu.memory_space<vmem>>, %arg2: memref<4x1xf32, #tpu.memory_space<vmem>>, %arg3: memref<4x1xf32, #tpu.memory_space<vmem>>, %arg4: memref<8x4xf32, #tpu.memory_space<vmem>>, %arg5: memref<8x1xf32, #tpu.memory_space<vmem>>, %arg6: memref<2x8x256xf32, #tpu.memory_space<vmem>>) attributes {dimension_semantics = [#tpu.dimension_semantics<arbitrary>], iteration_bounds = array<i64: 1>, scalar_prefetch = 0 : i64, scratch_operands = 0 : i64, tpu.core_type = #tpu.core_type<tc>, window_params = [{pipeline_mode = #tpu.pipeline_mode<synchronous>, transform_indices = @transform_0, window_bounds = array<i64: 2, 4, 256>}, {pipeline_mode = #tpu.pipeline_mode<synchronous>, transform_indices = @transform_1, window_bounds = array<i64: 4, 1>}, {pipeline_mode = #tpu.pipeline_mode<synchronous>, transform_indices = @transform_2, window_bounds = array<i64: 4, 1>}, {pipeline_mode = #tpu.pipeline_mode<synchronous>, transform_indices = @transform_3, window_bounds = array<i64: 8, 4>}, {pipeline_mode = #tpu.pipeline_mode<synchronous>, transform_indices = @transform_4, window_bounds = array<i64: 8, 1>}, {pipeline_mode = #tpu.pipeline_mode<synchronous>, transform_indices = @transform_5, window_bounds = array<i64: 2, 8, 256>}]} {
    %cst = arith.constant 0.000000e+00 : f32
    %0 = vector.broadcast %cst : f32 to vector<4x1xf32>
    %c0_i32 = arith.constant 0 : i32
    %c2_i32 = arith.constant 2 : i32
    %1 = arith.addi %c0_i32, %c2_i32 : i32
    %c1_i32 = arith.constant 1 : i32
    %2 = scf.for %arg7 = %c0_i32 to %1 step %c1_i32 iter_args(%arg8 = %0) -> (vector<4x1xf32>)  : i32 {
      %19 = arith.index_cast %arg7 : i32 to index
      %c0_16 = arith.constant 0 : index
      %c0_17 = arith.constant 0 : index
      %20 = vector.load %arg1[%19, %c0_16, %c0_17] : memref<2x4x256xf32, #tpu.memory_space<vmem>>, vector<1x4x256xf32>
      %21 = vector.shape_cast %20 : vector<1x4x256xf32> to vector<4x256xf32>
      %cst_18 = arith.constant dense<0.000000e+00> : vector<4xf32>
      %22 = vector.multi_reduction <add>, %21, %cst_18 [1] : vector<4x256xf32> to vector<4xf32>
      %23 = vector.shape_cast %22 : vector<4xf32> to vector<4x1xf32>
      %24 = arith.addf %arg8, %23 : vector<4x1xf32>
      scf.yield %24 : vector<4x1xf32>
    }
    %c2_i32_0 = arith.constant 2 : i32
    %cst_1 = arith.constant 0.001953125 : f32
    %3 = vector.broadcast %cst_1 : f32 to vector<4x1xf32>
    %4 = arith.mulf %2, %3 : vector<4x1xf32>
    %cst_2 = arith.constant 0.000000e+00 : f32
    %5 = vector.broadcast %cst_2 : f32 to vector<4x1xf32>
    %c0_i32_3 = arith.constant 0 : i32
    %c2_i32_4 = arith.constant 2 : i32
    %6 = arith.addi %c0_i32_3, %c2_i32_4 : i32
    %c1_i32_5 = arith.constant 1 : i32
    %7 = scf.for %arg7 = %c0_i32_3 to %6 step %c1_i32_5 iter_args(%arg8 = %5) -> (vector<4x1xf32>)  : i32 {
      %19 = arith.index_cast %arg7 : i32 to index
      %c0_16 = arith.constant 0 : index
      %c0_17 = arith.constant 0 : index
      %20 = vector.load %arg1[%19, %c0_16, %c0_17] : memref<2x4x256xf32, #tpu.memory_space<vmem>>, vector<1x4x256xf32>
      %21 = vector.shape_cast %20 : vector<1x4x256xf32> to vector<4x256xf32>
      %22 = vector.broadcast %4 : vector<4x1xf32> to vector<4x256xf32>
      %23 = arith.subf %21, %22 : vector<4x256xf32>
      %24 = arith.mulf %23, %23 : vector<4x256xf32>
      %cst_18 = arith.constant dense<0.000000e+00> : vector<4xf32>
      %25 = vector.multi_reduction <add>, %24, %cst_18 [1] : vector<4x256xf32> to vector<4xf32>
      %26 = vector.shape_cast %25 : vector<4xf32> to vector<4x1xf32>
      %27 = arith.addf %arg8, %26 : vector<4x1xf32>
      scf.yield %27 : vector<4x1xf32>
    }
    %c2_i32_6 = arith.constant 2 : i32
    %cst_7 = arith.constant 0.001953125 : f32
    %8 = vector.broadcast %cst_7 : f32 to vector<4x1xf32>
    %9 = arith.mulf %7, %8 : vector<4x1xf32>
    %cst_8 = arith.constant 9.99999974E-6 : f32
    %10 = vector.broadcast %cst_8 : f32 to vector<4x1xf32>
    %11 = arith.addf %9, %10 : vector<4x1xf32>
    %12 = math.rsqrt %11 : vector<4x1xf32>
    %c0 = arith.constant 0 : index
    %c0_9 = arith.constant 0 : index
    %13 = vector.load %arg2[%c0, %c0_9] : memref<4x1xf32, #tpu.memory_space<vmem>>, vector<4x1xf32>
    %14 = arith.mulf %13, %12 : vector<4x1xf32>
    %c0_10 = arith.constant 0 : index
    %c0_11 = arith.constant 0 : index
    %15 = vector.load %arg3[%c0_10, %c0_11] : memref<4x1xf32, #tpu.memory_space<vmem>>, vector<4x1xf32>
    %16 = arith.mulf %4, %14 : vector<4x1xf32>
    %17 = arith.subf %15, %16 : vector<4x1xf32>
    %c0_i32_12 = arith.constant 0 : i32
    %c2_i32_13 = arith.constant 2 : i32
    %18 = arith.addi %c0_i32_12, %c2_i32_13 : i32
    %c1_i32_14 = arith.constant 1 : i32
    scf.for %arg7 = %c0_i32_12 to %18 step %c1_i32_14  : i32 {
      %19 = arith.index_cast %arg7 : i32 to index
      %c0_16 = arith.constant 0 : index
      %c0_17 = arith.constant 0 : index
      %20 = vector.load %arg1[%19, %c0_16, %c0_17] : memref<2x4x256xf32, #tpu.memory_space<vmem>>, vector<1x4x256xf32>
      %21 = vector.shape_cast %20 : vector<1x4x256xf32> to vector<4x256xf32>
      %22 = vector.broadcast %14 : vector<4x1xf32> to vector<4x256xf32>
      %23 = arith.mulf %21, %22 : vector<4x256xf32>
      %24 = vector.broadcast %17 : vector<4x1xf32> to vector<4x256xf32>
      %25 = arith.addf %23, %24 : vector<4x256xf32>
      %cst_18 = arith.constant 0.000000e+00 : f32
      %26 = vector.broadcast %cst_18 : f32 to vector<4x256xf32>
      %27 = arith.maximumf %25, %26 : vector<4x256xf32>
      %c0_19 = arith.constant 0 : index
      %c0_20 = arith.constant 0 : index
      %28 = vector.load %arg4[%c0_19, %c0_20] : memref<8x4xf32, #tpu.memory_space<vmem>>, vector<8x4xf32>
      %cst_21 = arith.constant dense<0.000000e+00> : vector<8x256xf32>
      %29 = tpu.matmul %28, %27, %cst_21 {dimension_numbers = #tpu.dot_dimension_numbers<[1], [0], [0], [1], [0, 0, 1, 1], [], []>} : vector<8x4xf32>, vector<4x256xf32>, vector<8x256xf32> -> vector<8x256xf32>
      %c0_22 = arith.constant 0 : index
      %c0_23 = arith.constant 0 : index
      %30 = vector.load %arg5[%c0_22, %c0_23] : memref<8x1xf32, #tpu.memory_space<vmem>>, vector<8x1xf32>
      %31 = vector.broadcast %30 : vector<8x1xf32> to vector<8x256xf32>
      %32 = arith.addf %29, %31 : vector<8x256xf32>
      %33 = arith.index_cast %arg7 : i32 to index
      %c0_24 = arith.constant 0 : index
      %c0_25 = arith.constant 0 : index
      %34 = vector.load %arg6[%33, %c0_24, %c0_25] : memref<2x8x256xf32, #tpu.memory_space<vmem>>, vector<1x8x256xf32>
      %35 = vector.shape_cast %34 : vector<1x8x256xf32> to vector<8x256xf32>
      %36 = vector.shape_cast %32 : vector<8x256xf32> to vector<1x8x256xf32>
      tpu.vector_store %arg6[%33, %c0_24, %c0_25], %36 {strides = array<i32>} : memref<2x8x256xf32, #tpu.memory_space<vmem>>, vector<1x8x256xf32>,
    }
    %c2_i32_15 = arith.constant 2 : i32
    return
  }
  func.func @transform_0(%arg0: i32) -> (i32, i32, i32) {
    %c0_i32 = arith.constant 0 : i32
    %c0_i32_0 = arith.constant 0 : i32
    %c0_i32_1 = arith.constant 0 : i32
    %c0_i32_2 = arith.constant 0 : i32
    return %c0_i32, %c0_i32_0, %c0_i32_1 : i32, i32, i32
  }
  func.func @transform_1(%arg0: i32) -> (i32, i32) {
    %c0_i32 = arith.constant 0 : i32
    %c0_i32_0 = arith.constant 0 : i32
    %c0_i32_1 = arith.constant 0 : i32
    return %c0_i32, %c0_i32_0 : i32, i32
  }
  func.func @transform_2(%arg0: i32) -> (i32, i32) {
    %c0_i32 = arith.constant 0 : i32
    %c0_i32_0 = arith.constant 0 : i32
    %c0_i32_1 = arith.constant 0 : i32
    return %c0_i32, %c0_i32_0 : i32, i32
  }
  func.func @transform_3(%arg0: i32) -> (i32, i32) {
    %c0_i32 = arith.constant 0 : i32
    %c0_i32_0 = arith.constant 0 : i32
    %c0_i32_1 = arith.constant 0 : i32
    return %c0_i32, %c0_i32_0 : i32, i32
  }
  func.func @transform_4(%arg0: i32) -> (i32, i32) {
    %c0_i32 = arith.constant 0 : i32
    %c0_i32_0 = arith.constant 0 : i32
    %c0_i32_1 = arith.constant 0 : i32
    return %c0_i32, %c0_i32_0 : i32, i32
  }
  func.func @transform_5(%arg0: i32) -> (i32, i32, i32) {
    %c0_i32 = arith.constant 0 : i32
    %c0_i32_0 = arith.constant 0 : i32
    %c0_i32_1 = arith.constant 0 : i32
    %c0_i32_2 = arith.constant 0 : i32
    return %c0_i32, %c0_i32_0, %c0_i32_1 : i32, i32, i32
  }
}

</mosaic_0001>

<bundles_post_ra>
// kernel: tpu_custom_call.1
= control target key start
LH: loop header
LB: loop body
LE: loop exit
PB: predicated region body
PF: predicated region fallthrough
CT: control target
= control target key end

     0   :  { %10 = vsyncpa [#allocation3], 0  ;;  %v367_v0 = vmov 0.0   ;;  %s371_s18 = smov 0   ;;  %s477_s0 = inlined_call_operand.vmem [shape: f32[2,4,256], index: 0, kind: input, shape index: {}]   ;;  %s478_s1 = inlined_call_operand.vmem [shape: f32[4,1], index: 1, kind: input, shape index: {}]   ;;  %s479_s2 = inlined_call_operand.vmem [shape: f32[4,1], index: 2, kind: input, shape index: {}]   ;;  %s480_s3 = inlined_call_operand.vmem [shape: f32[8,4], index: 3, kind: input, shape index: {}]   ;;  %s481_s4 = inlined_call_operand.vmem [shape: f32[8,1], index: 4, kind: input, shape index: {}]   ;;  %s482_s5 = inlined_call_operand.hbm [shape: f32[2,8,256], index: 5, kind: output, shape index: {}]  }
   0x1 LB: > { %s268_s19 = sshll.u32 %s373_s18, 3  ;;  %vm35_vm0 = vcmask 1043456   ;;  %s26_s18 = sadd.s32 1, %s373_s18   ;;  %s373_s18 = sphi %s371_s18, %s26_s18   ;;  %v369_v0 = vphi %v367_v0, %v368_v0  }
   0x2   : > { %s30_s22 = scalar_lea.vmem %s477_s0, %s268_s19  ;;  %p23_p0 = scmp.ge.s32.totalorder %s26_s18, 2  }
   0x3   : > { %v31_v1 = vld [vmem:[%s30_s22] sm:$0xff]  ;;  %v375_v9 = vmov (%p23_p0), 0.0   ;;  %s379_s23 = smov (%p23_p0), 0  }
   0x4   : > { %v33_v2 = vcombine.high %v31_v1, %v31_v1  ;;  %v36_v3 = vsel %vm35_vm0, %v31_v1, 0.0 }
   0x6   : > { %v37_v4 = vsel %vm35_vm0, %v33_v2, 0.0 }
   0x7   : > { %v38_v5 = vadd.f32 %v37_v4, %v36_v3 }
   0x9   : > { %39 = vadd.xlane.f32.xlu0 %v38_v5 }
  0x93   :  { %25 = sbr.rel (!%p23_p0) target bundleno = 1 (0x1), region = 65 }
  0x96   : > { %v40_v6 = vpop.xlane.xlu0 %39 }
  0x97   : > { %v41_v7 = vadd.f32 %v369_v0, %v40_v6  }
  0x99   : > { %v368_v0 = vmov %v41_v7   ;;  %v42_v8 = vmul.f32 (%p23_p0), 0.001953125, %v41_v7 }
  0x9a LB: > { %v58_v10 = vlaneseq  ;;  %v387_v11 = vmov 839922192   ;;  %s269_s24 = sshll.u32 %s381_s23, 3  ;;  %s48_s23 = sadd.s32 1, %s381_s23   ;;  %s381_s23 = sphi %s379_s23, %s48_s23   ;;  %v377_v9 = vphi %v375_v9, %v376_v9  }
  0x9b   : > { %v56_v12 = vunpack.c.l.s4 %v387_v11  ;;  %s52_s27 = scalar_lea.vmem %s477_s0, %s269_s24  ;;  %p45_p1 = scmp.ge.s32.totalorder %s48_s23, 2  }
  0x9c   : > { %v59_v13 = vshrl.u32 %v58_v10, 7  ;;  %v53_v16 = vld [vmem:[%s52_s27] sm:$0xff]  ;;  %s442_s7 = smov (%p45_p1), 0  }
  0x9d   : > { %v57_v14 = vunpack.c.0.s8 %v56_v12  ;;  %v78_v28 = vld [vmem:[%s478_s1] sm:$0xf] (%p45_p1) }
  0x9e   :  { %v80_v31 = vld [vmem:[%s479_s2] sm:$0xf] (%p45_p1) }
  0x9f   : > { %v431_v15 = vsub.s32 %v57_v14, %v59_v13 }
  0xa1   : > { %v61_v17 = vrot.slane %v42_v8, %v431_v15 }
  0xa3   : > { %v63_v18 = vsub.f32 %v53_v16, %v61_v17 }
  0xa5   : > { %v64_v19 = vmul.f32 %v63_v18, %v63_v18 }
  0xa7   : > { %v66_v20 = vcombine.high %v64_v19, %v64_v19  ;;  %v69_v21 = vsel %vm35_vm0, %v64_v19, 0.0 }
  0xa9   : > { %v70_v22 = vsel %vm35_vm0, %v66_v20, 0.0 }
  0xaa   : > { %v71_v23 = vadd.f32 %v70_v22, %v69_v21 }
  0xac   : > { %72 = vadd.xlane.f32.xlu0 %v71_v23 }
 0x136   :  { %47 = sbr.rel (!%p45_p1) target bundleno = 154 (0x9a), region = 76 }
 0x139   : > { %v73_v24 = vpop.xlane.xlu0 %72 }
 0x13a   : > { %v74_v25 = vadd.f32 %v377_v9, %v73_v24  }
 0x13c   : > { %v376_v9 = vmov %v74_v25   ;;  %v75_v26 = vmul.f32 (%p45_p1), 0.001953125, %v74_v25 }
 0x13e   :  { %v76_v27 = vadd.f32 1e-05, %v75_v26 }
 0x140   :  { %319 = vrsqrt.f32 %v76_v27 }
 0x14a   :  { %v320_v29 = vpop.eup %319 }
 0x14b   :  { %v79_v30 = vmul.f32 %v320_v29, %v78_v28 }
 0x14d   :  { %v81_v32 = vmul.f32 %v79_v30, %v42_v8 }
 0x14f   :  { %v82_v33 = vsub.f32 %v80_v31, %v81_v32 }
 0x150 LB: > { %v388_v34 = vmov 0   ;;  %v389_v35 = vmov 0.0   ;;  %v121_v36 = vld [vmem:[%s481_s4] sm:$0xff]  ;;  %s270_s2 = sshll.u32 %s385_s7, 3  ;;  %vm129_vm1 = vcmask 31744   ;;  %s271_s14 = sshll.u32 %s385_s7, 4  ;;  %s385_s7 = sphi %s442_s7, %s88_s7  }
 0x151   : > { %321 = vset.pattern.permute.xlu0 %v388_v34  ;;  %322 = vset.pattern.permute.xlu1 %v388_v34  ;;  %s91_s11 = scalar_lea.vmem %s477_s0, %s270_s2  ;;  %v120_v46 = vld [vmem:[%s480_s3] sm:$0xff]  ;;  %s210_s15 = scalar_lea.vmem [#allocation2], %s271_s14 }
 0x152   : > { %95 = vperm.xlu0 %321, %v79_v30   ;;  %202 = vmatprep.mubr.f32.mxu0 %v389_v35  ;;  %v92_v39 = vld [vmem:[%s91_s11] sm:$0xff]  ;;  %s88_s7 = sadd.s32 1, %s385_s7  }
 0x153   : > { %124 = vperm.xlu1 %322, %v121_v36   ;;  %p85_p2 = scmp.ge.s32.totalorder %s88_s7, 2  }
 0x154   :  { %s390_s16 = smov (%p85_p2), [#allocation2]  }
 0x155   :  { %s218_s17 = sshll.u32 (%p85_p2), %s390_s16, 4  ;;  %s219_s17 = int_to_ptr.vmem [resolvable:$true] %s218_s17 }
 0x156   : > { %108 = vperm.xlu0 %321, %v82_v33   ;;  %s323_s18 = scalar_lea.vmem (%p85_p2), %s219_s17, 512  ;;  %p328_p4 = scmp.lt.s32.totalorder (%p85_p2), %s219_s17, %s219_s17 }
 0x157   :  { %p324_p3 = scmp.ne.s32.totalorder (%p85_p2), %s219_s17, %s323_s18  ;;  %p329_p5 = scmp.lt.s32.totalorder (%p85_p2), %s323_s18, %s323_s18 }
 0x159   :  { %p330_p6 = por (%p85_p2), %p329_p5, %p328_p4 }
 0x15b   :  { %p331_p7 = pnand (%p85_p2), %p330_p6, %p324_p3 }
 0x1d1   : > { %v96_v37 = vpop.permute.xlu0 %95 }
 0x1d2   : > { %v103_v38 = vrot.slane %v96_v37, %v431_v15  ;;  %v125_v47 = vpop.permute.xlu1 %124 }
 0x1d4   : > { %v105_v41 = vmul.f32 %v103_v38, %v92_v39 }
 0x1d5   : > { %v109_v40 = vpop.permute.xlu0 %108 }
 0x1d6   : > { %v116_v42 = vrot.slane %v109_v40, %v431_v15 }
 0x1d8   : > { %v118_v43 = vadd.f32 %v116_v42, %v105_v41 }
 0x1da   : > { %v119_v44 = vmax.f32 %v118_v43, 0.0 }
 0x1dc   : > { %v128_v45 = vcombine.high %v119_v44, %v119_v44 }
 0x1de   : > { %264 = vmatprep.subr.msk.mxu0 %vm35_vm0, %v128_v45 }
 0x1df   : > { %265 = vmatpush1.msk.msra.mxu0 %vm35_vm0, %v119_v44 }
 0x1e0   : > { %266 = vmatmul.mubr.msk.f32.vlgmr.msra.gmra.mrb[0].mxu0 %vm129_vm1, %v120_v46 }
 0x2b1   :  { %87 = sbr.rel (!%p85_p2) target bundleno = 336 (0x150), region = 87 }
 0x2b3   : > { %v204_v48 = vpop.f32.mrb[0].mxu0 }
 0x2b4   : > { %v205_v49 = vadd.f32 %v204_v48, %v125_v47  ;;  %v206_v50 = vpop.f32.mrb[1].mxu0 }
 0x2b5   : > { %v207_v51 = vadd.f32 %v206_v50, %v125_v47 }
 0x2b6   : > { %211 = vst [vmem:[%s210_s15] sm:$0xff] %v205_v49 }
 0x2b7   : > { %212 = vst [vmem:[%s210_s15 + $0x8] sm:$0xff] %v207_v51 }
 0x2b8   :  { %334 = shalt.err (!%p331_p7)
}
 0x2b9   :  { %s335_s21 = scalar_lea.hbm %s482_s5, 512 }
 0x2ba   :  { %p336_p8 = scmp.ne.s32.totalorder %s482_s5, %s335_s21  ;;  %p339_p9 = scmp.lt.u32.totalorder %s335_s21, %s482_s5 }
 0x2bc   :  { %p341_p10 = pnand %p339_p9, %p336_p8 }
 0x2be   :  { %344 = shalt.err (!%p341_p10)
}
 0x2bf   :  { %s391_s0 = smov 256   ;;  %s392_s3 = smov 16  }
 0x2c0   :  { %224 = dma.vmem_to_hbm [thread:$0]  %s219_s17, 512, %s482_s5, [#allocation3], %s391_s0, %s391_s0, %s392_s3  }
 0x2c1   :  { %365 = dma.done.wait [#allocation3], 512  }
 0x2c2   :  { %366 = vsyncadd [#allocation3], 4294966784 }
 0x2c3   :  { %228 = vsyncpa [#allocation3], 1 }

</bundles_post_ra>
